<compile_context>
chip_gen: v5e
topology: v5e:2x2
jax: 0.10.0
libtpu: 0.0.40
codegen_flags: <defaults>
</compile_context>

<pallas_src>
import jax
import jax.numpy as jnp
from jax.experimental import pallas as pl
from jax.experimental.pallas import tpu as pltpu


def _round_up(x, m):
    return ((x + m - 1) // m) * m


def _make_embedder_kernel(n_rest):
    """Kernel closure for a given number of post-lin1 Linear layers.

    Per-grid-step refs:
      idx_exp : (tile_b, L*n_aa) int32  -- idx[b,l] + l*n_aa, broadcast over n_aa lanes
      m1      : (L*n_aa, d1)     f32    -- relu(block_diag(emb)) @ W1 (precomputed)
      b1      : (1, d1)          f32
      (w_i, b_i) * n_rest        f32    -- remaining Linear layers (last padded to 128 lanes)
      out     : (tile_b, out_pad) f32
    """

    def kernel(idx_ref, m1_ref, b1_ref, *rest):
        wb_refs = rest[: 2 * n_rest]
        out_ref = rest[2 * n_rest]

        bsz, width = idx_ref.shape

        # One-hot of the offset token indices: one lane iota + one VPU compare.
        col = jax.lax.broadcasted_iota(jnp.int32, (bsz, width), 1)
        onehot = (idx_ref[...] == col).astype(jnp.float32)

        # Fused embedding-lookup + ReLU + lin1: a single MXU matmul.
        h = jnp.dot(onehot, m1_ref[...], preferred_element_type=jnp.float32)
        h = h + b1_ref[...]

        # Remaining layers: ReLU before every Linear, none after the last.
        for i in range(n_rest):
            w_ref = wb_refs[2 * i]
            b_ref = wb_refs[2 * i + 1]
            h = jnp.maximum(h, 0.0)
            h = jnp.dot(h, w_ref[...], preferred_element_type=jnp.float32)
            h = h + b_ref[...]

        out_ref[...] = h.astype(out_ref.dtype)

    return kernel


def embedder_forward(idx, emb_table, weights_t, biases, *, max_tile_b=512):
    """Fused Embedder forward.

    idx        : (B, L) int32 token indices
    emb_table  : (n_aa, D0) float32
    weights_t  : list of (in_dim, out_dim) float32 (already transposed)
    biases     : list of (1, out_dim) float32
    returns    : (B, out_dim_last) float32
    """
    B, L = idx.shape
    n_aa, D0 = emb_table.shape
    out_dim = weights_t[-1].shape[1]
    width = L * n_aa

    # ---- Param prep (plain JAX, runs once outside the kernel) -----------
    # relu(onehot @ block_diag(emb)) == onehot @ relu(block_diag(emb)) because
    # each output column is a single selected element; fold lin1 in as well:
    #   M1[l*n_aa + a, :] = relu(emb[a, :]) @ W1[l*D0:(l+1)*D0, :]
    relu_emb = jnp.maximum(emb_table, 0.0)                         # (n_aa, D0)
    w1_blocks = weights_t[0].reshape(L, D0, weights_t[0].shape[1])  # (L, D0, d1)
    m1 = jnp.einsum("ad,ldo->lao", relu_emb, w1_blocks,
                    precision=jax.lax.Precision.HIGHEST).reshape(width, -1)
    b1 = biases[0]

    rest_w = list(weights_t[1:])
    rest_b = list(biases[1:])

    # Lane-dense output: pad the last layer's columns to a multiple of 128.
    out_pad = max(128, _round_up(out_dim, 128))
    pad_cols = out_pad - out_dim
    if rest_w:
        rest_w[-1] = jnp.pad(rest_w[-1], ((0, 0), (0, pad_cols)))
        rest_b[-1] = jnp.pad(rest_b[-1], ((0, 0), (0, pad_cols)))
    else:  # lin1 is the last layer
        m1 = jnp.pad(m1, ((0, 0), (0, pad_cols)))
        b1 = jnp.pad(b1, ((0, 0), (0, pad_cols)))

    # Pre-expand indices to a lane-dense (B, L*n_aa) block:
    #   idx_exp[b, l*n_aa + j] = idx[b, l] + l*n_aa
    offs = (jnp.arange(L, dtype=jnp.int32) * n_aa)[None, :]
    idx_exp = jnp.repeat(idx.astype(jnp.int32) + offs, n_aa, axis=1)

    # ---- Batch tiling ----------------------------------------------------
    # Small batches: single tile. Larger batches: >= 2 tiles (v7x 2-TC
    # sharding via "parallel"), each as big as possible up to max_tile_b.
    if B < 16:
        tile_b = _round_up(B, 8)
    else:
        tile_b = min(max_tile_b, _round_up(pl.cdiv(B, 2), 8))
    b_pad = _round_up(B, tile_b)
    if b_pad != B:
        idx_exp = jnp.pad(idx_exp, ((0, b_pad - B), (0, 0)))

    kernel = _make_embedder_kernel(len(rest_w))

    inputs = [idx_exp, m1, b1]
    in_specs = [
        pl.BlockSpec((tile_b, width), lambda i: (i, 0)),   # batch-tiled indices
        pl.BlockSpec(m1.shape, lambda i: (0, 0)),          # resident fused table
        pl.BlockSpec(b1.shape, lambda i: (0, 0)),          # resident bias
    ]
    for w, b in zip(rest_w, rest_b):
        inputs += [w, b]
        in_specs += [
            pl.BlockSpec(w.shape, lambda i: (0, 0)),       # resident weights
            pl.BlockSpec(b.shape, lambda i: (0, 0)),       # resident bias
        ]

    out = pl.pallas_call(
        kernel,
        out_shape=jax.ShapeDtypeStruct((b_pad, out_pad), jnp.float32),
        grid=(b_pad // tile_b,),
        in_specs=in_specs,
        out_specs=pl.BlockSpec((tile_b, out_pad), lambda i: (i, 0)),
        compiler_params=pltpu.CompilerParams(
            dimension_semantics=("parallel",),
        ),
    )(*inputs)
    return out[:B, :out_dim]


def embedder_reference(idx, emb_table, weights_t, biases):
    """Pure-JAX reference matching the PyTorch module semantics."""
    B = idx.shape[0]
    e = jnp.take(emb_table, idx, axis=0).reshape(B, -1)      # emb(X).view(b, -1)
    h = e
    for w, b in zip(weights_t, biases):
        h = jnp.maximum(h, 0.0)                              # ReLU before each Linear
        h = h @ w + b
    return h


if __name__ == "__main__":
    # Module hyperparameters (small, consistent with Embedder(n_aa, dims, L)).
    n_aa = 16
    L = 8
    dims = (8, 32, 16)   # emb dim D0=8, lin1: 64 -> 32, then Linear(32 -> 16)
    B = 8

    key = jax.random.PRNGKey(0)
    k_idx, k_emb, *k_lin = jax.random.split(key, 2 + 2 * len(dims))

    # Token indices (B, L).
    idx = jax.random.randint(k_idx, (B, L), 0, n_aa, dtype=jnp.int32)

    # nn.Embedding(n_aa, dims[0]) weight ~ N(0, 1).
    emb_table = jax.random.normal(k_emb, (n_aa, dims[0]), dtype=jnp.float32)

    # Linear layers: lin1 (dims[0]*L -> dims[1]) then Linear(d1 -> d2) for
    # consecutive pairs of dims[1:]. PyTorch-like uniform init, pre-transposed
    # to (in, out).
    layer_dims = [(dims[0] * L, dims[1])] + list(zip(dims[1:-1], dims[2:]))
    weights_t, biases = [], []
    for i, (din, dout) in enumerate(layer_dims):
        bound = 1.0 / jnp.sqrt(jnp.float32(din))
        kw, kb = jax.random.split(k_lin[i])
        weights_t.append(jax.random.uniform(kw, (din, dout), jnp.float32, -bound, bound))
        biases.append(jax.random.uniform(kb, (1, dout), jnp.float32, -bound, bound))

    out = embedder_forward(idx, emb_table, weights_t, biases)
    out = jax.block_until_ready(out)

    ref = embedder_reference(idx, emb_table, weights_t, biases)
    assert out.shape == (B, dims[-1]), out.shape
    assert jnp.allclose(out, ref, atol=1e-4, rtol=1e-4), (
        float(jnp.max(jnp.abs(out - ref)))
    )

    print("KERNEL_OK")
</pallas_src>

<mosaic_0001>
module attributes {stable_mosaic.version = 11 : i64} {
  func.func @kernel(%arg0: i32, %arg1: memref<8x128xi32, #tpu.memory_space<vmem>>, %arg2: memref<128x32xf32, #tpu.memory_space<vmem>>, %arg3: memref<1x32xf32, #tpu.memory_space<vmem>>, %arg4: memref<32x128xf32, #tpu.memory_space<vmem>>, %arg5: memref<1x128xf32, #tpu.memory_space<vmem>>, %arg6: memref<8x128xf32, #tpu.memory_space<vmem>>) attributes {dimension_semantics = [#tpu.dimension_semantics<parallel>], iteration_bounds = array<i64: 1>, scalar_prefetch = 0 : i64, scratch_operands = 0 : i64, tpu.core_type = #tpu.core_type<tc>, window_params = [{transform_indices = @transform_0, window_bounds = array<i64: 8, 128>}, {pipeline_mode = #tpu.pipeline_mode<synchronous>, transform_indices = @transform_1, window_bounds = array<i64: 128, 32>}, {pipeline_mode = #tpu.pipeline_mode<synchronous>, transform_indices = @transform_2, window_bounds = array<i64: 1, 32>}, {pipeline_mode = #tpu.pipeline_mode<synchronous>, transform_indices = @transform_3, window_bounds = array<i64: 32, 128>}, {pipeline_mode = #tpu.pipeline_mode<synchronous>, transform_indices = @transform_4, window_bounds = array<i64: 1, 128>}, {transform_indices = @transform_5, window_bounds = array<i64: 8, 128>}]} {
    %0 = tpu.iota {dimensions = array<i32: 1>} : vector<8x128xi32>
    %c0 = arith.constant 0 : index
    %c0_0 = arith.constant 0 : index
    %1 = vector.load %arg1[%c0, %c0_0] : memref<8x128xi32, #tpu.memory_space<vmem>>, vector<8x128xi32>
    %2 = arith.cmpi eq, %1, %0 : vector<8x128xi32>
    %3 = arith.extui %2 : vector<8x128xi1> to vector<8x128xi32>
    %4 = arith.sitofp %3 : vector<8x128xi32> to vector<8x128xf32>
    %c0_1 = arith.constant 0 : index
    %c0_2 = arith.constant 0 : index
    %5 = vector.load %arg2[%c0_1, %c0_2] : memref<128x32xf32, #tpu.memory_space<vmem>>, vector<128x32xf32>
    %cst = arith.constant dense<0.000000e+00> : vector<8x32xf32>
    %6 = tpu.matmul %4, %5, %cst {dimension_numbers = #tpu.dot_dimension_numbers<[1], [0], [0], [1], [0, 0, 1, 1], [], []>} : vector<8x128xf32>, vector<128x32xf32>, vector<8x32xf32> -> vector<8x32xf32>
    %c0_3 = arith.constant 0 : index
    %c0_4 = arith.constant 0 : index
    %7 = vector.load %arg3[%c0_3, %c0_4] : memref<1x32xf32, #tpu.memory_space<vmem>>, vector<1x32xf32>
    %8 = vector.broadcast %7 : vector<1x32xf32> to vector<8x32xf32>
    %9 = arith.addf %6, %8 : vector<8x32xf32>
    %cst_5 = arith.constant 0.000000e+00 : f32
    %10 = vector.broadcast %cst_5 : f32 to vector<8x32xf32>
    %11 = arith.maximumf %9, %10 : vector<8x32xf32>
    %c0_6 = arith.constant 0 : index
    %c0_7 = arith.constant 0 : index
    %12 = vector.load %arg4[%c0_6, %c0_7] : memref<32x128xf32, #tpu.memory_space<vmem>>, vector<32x128xf32>
    %cst_8 = arith.constant dense<0.000000e+00> : vector<8x128xf32>
    %13 = tpu.matmul %11, %12, %cst_8 {dimension_numbers = #tpu.dot_dimension_numbers<[1], [0], [0], [1], [0, 0, 1, 1], [], []>} : vector<8x32xf32>, vector<32x128xf32>, vector<8x128xf32> -> vector<8x128xf32>
    %c0_9 = arith.constant 0 : index
    %c0_10 = arith.constant 0 : index
    %14 = vector.load %arg5[%c0_9, %c0_10] : memref<1x128xf32, #tpu.memory_space<vmem>>, vector<1x128xf32>
    %15 = vector.broadcast %14 : vector<1x128xf32> to vector<8x128xf32>
    %16 = arith.addf %13, %15 : vector<8x128xf32>
    %c0_11 = arith.constant 0 : index
    %c0_12 = arith.constant 0 : index
    %17 = vector.load %arg6[%c0_11, %c0_12] : memref<8x128xf32, #tpu.memory_space<vmem>>, vector<8x128xf32>
    tpu.vector_store %arg6[%c0_11, %c0_12], %16 {strides = array<i32>} : memref<8x128xf32, #tpu.memory_space<vmem>>, vector<8x128xf32>,
    return
  }
  func.func @transform_0(%arg0: i32) -> (i32, i32) {
    %c0_i32 = arith.constant 0 : i32
    %c0_i32_0 = arith.constant 0 : i32
    return %arg0, %c0_i32 : i32, i32
  }
  func.func @transform_1(%arg0: i32) -> (i32, i32) {
    %c0_i32 = arith.constant 0 : i32
    %c0_i32_0 = arith.constant 0 : i32
    %c0_i32_1 = arith.constant 0 : i32
    return %c0_i32, %c0_i32_0 : i32, i32
  }
  func.func @transform_2(%arg0: i32) -> (i32, i32) {
    %c0_i32 = arith.constant 0 : i32
    %c0_i32_0 = arith.constant 0 : i32
    %c0_i32_1 = arith.constant 0 : i32
    return %c0_i32, %c0_i32_0 : i32, i32
  }
  func.func @transform_3(%arg0: i32) -> (i32, i32) {
    %c0_i32 = arith.constant 0 : i32
    %c0_i32_0 = arith.constant 0 : i32
    %c0_i32_1 = arith.constant 0 : i32
    return %c0_i32, %c0_i32_0 : i32, i32
  }
  func.func @transform_4(%arg0: i32) -> (i32, i32) {
    %c0_i32 = arith.constant 0 : i32
    %c0_i32_0 = arith.constant 0 : i32
    %c0_i32_1 = arith.constant 0 : i32
    return %c0_i32, %c0_i32_0 : i32, i32
  }
  func.func @transform_5(%arg0: i32) -> (i32, i32) {
    %c0_i32 = arith.constant 0 : i32
    %c0_i32_0 = arith.constant 0 : i32
    return %arg0, %c0_i32 : i32, i32
  }
}

</mosaic_0001>

<bundles_post_ra>
// kernel: tpu_custom_call.1
= control target key start
LH: loop header
LB: loop body
LE: loop exit
PB: predicated region body
PF: predicated region fallthrough
CT: control target
= control target key end

     0   :  { %s254_s0 = inlined_call_operand.vmem [shape: s32[8,128], index: 0, kind: input, shape index: {}]   ;;  %s255_s1 = inlined_call_operand.vmem [shape: f32[128,32], index: 1, kind: input, shape index: {}]   ;;  %s256_s2 = inlined_call_operand.vmem [shape: f32[1,32], index: 2, kind: input, shape index: {}]   ;;  %s257_s3 = inlined_call_operand.vmem [shape: f32[32,128], index: 3, kind: input, shape index: {}]   ;;  %s258_s4 = inlined_call_operand.vmem [shape: f32[1,128], index: 4, kind: input, shape index: {}]   ;;  %s259_s5 = inlined_call_operand.hbm [shape: f32[8,128], index: 5, kind: output, shape index: {}]  }
   0x1   :  { %v42_v0 = vld [vmem:[%s255_s1 + $0x78] sm:$0xff]  ;;  %v41_v1 = vld [vmem:[%s255_s1 + $0x70] sm:$0xff]  ;;  %v40_v2 = vld [vmem:[%s255_s1 + $0x68] sm:$0xff] }
   0x2   :  { %47 = vmatpush.msra.mxu0 %v42_v0  ;;  %v39_v3 = vld [vmem:[%s255_s1 + $0x60] sm:$0xff]  ;;  %v71_v4 = vld [vmem:[%s257_s3 + $0x18] sm:$0xff] }
   0x3   :  { %v38_v5 = vld [vmem:[%s255_s1 + $0x58] sm:$0xff]  ;;  %92 = vmatpush.msra.mxu1 %v71_v4 }
   0x4   :  { %48 = vmatpush.msra.mxu0 %v41_v1 }
   0x6   :  { %49 = vmatpush.msra.mxu0 %v40_v2 }
   0x8   :  { %50 = vmatpush.msra.mxu0 %v39_v3 }
   0x9   :  { %10 = vsyncpa [#allocation3], 0  ;;  %v37_v6 = vld [vmem:[%s255_s1 + $0x50] sm:$0xff]  ;;  %v36_v7 = vld [vmem:[%s255_s1 + $0x48] sm:$0xff]  ;;  %v21_v13 = vlaneseq  ;;  %v150_v20 = vmov 1.0   ;;  %vm76_vm1 = vcmask 261120  }
   0xa   :  { %51 = vmatpush.msra.mxu0 %v38_v5  ;;  %v35_v8 = vld [vmem:[%s255_s1 + $0x40] sm:$0xff]  ;;  %v34_v9 = vld [vmem:[%s255_s1 + $0x38] sm:$0xff]  ;;  %v33_v10 = vld [vmem:[%s255_s1 + $0x30] sm:$0xff]  ;;  %s151_s12 = smov [#allocation2]  }
   0xb   :  { %v32_v11 = vld [vmem:[%s255_s1 + $0x28] sm:$0xff]  ;;  %v31_v12 = vld [vmem:[%s255_s1 + $0x20] sm:$0xff]  ;;  %v30_v14 = vld [vmem:[%s255_s1 + $0x18] sm:$0xff]  ;;  %v22_v16 = vand.u32 127, %v21_v13  ;;  %s106_s13 = sshll.u32 %s151_s12, 4  ;;  %s107_s13 = int_to_ptr.vmem [resolvable:$true] %s106_s13 }
   0xc   :  { %52 = vmatpush.msra.mxu0 %v37_v6  ;;  %v29_v15 = vld [vmem:[%s255_s1 + $0x10] sm:$0xff]  ;;  %v28_v17 = vld [vmem:[%s255_s1 + $0x8] sm:$0xff]  ;;  %v23_v18 = vld [vmem:[%s254_s0] sm:$0xff] }
   0xd   :  { %v27_v19 = vld [vmem:[%s255_s1] sm:$0xff]  ;;  %vm24_vm0 = vcmp.eq.s32.totalorder %v23_v18, %v22_v16  ;;  %v70_v21 = vld [vmem:[%s257_s3 + $0x10] sm:$0xff]  ;;  %v69_v22 = vld [vmem:[%s257_s3 + $0x8] sm:$0xff] }
   0xe   :  { %53 = vmatpush.msra.mxu0 %v36_v7  ;;  %93 = vmatpush.msra.mxu1 %v70_v21  ;;  %v68_v23 = vld [vmem:[%s257_s3] sm:$0xff]  ;;  %s108_s3 = sshll.u32 %s259_s5, 4  ;;  %s109_s3 = int_to_ptr.hbm [resolvable:$true] %s108_s3 }
   0xf   :  { %v122_v24 = vld [vmem:[%s256_s2] ss:$0 sm:$0xff] }
  0x10   :  { %54 = vmatpush.msra.mxu0 %v35_v8  ;;  %94 = vmatpush.msra.mxu1 %v69_v22  ;;  %v123_v28 = vld [vmem:[%s258_s4] ss:$0 sm:$0xff] }
  0x12   :  { %55 = vmatpush.msra.mxu0 %v34_v9  ;;  %95 = vmatpush.msra.mxu1 %v68_v23 }
  0x14   :  { %56 = vmatpush.msra.mxu0 %v33_v10 }
  0x16   :  { %57 = vmatpush.msra.mxu0 %v32_v11 }
  0x18   :  { %58 = vmatpush.msra.mxu0 %v31_v12 }
  0x1a   :  { %59 = vmatpush.msra.mxu0 %v30_v14 }
  0x1c   :  { %60 = vmatpush.msra.mxu0 %v29_v15 }
  0x1e   :  { %61 = vmatpush.msra.mxu0 %v28_v17 }
  0x20   :  { %62 = vmatpush.msra.mxu0 %v27_v19 }
  0x21   :  { %118 = vmatmul.msk.f32.vlgmr.msra.gmra.mxu0 %vm24_vm0, %v150_v20 }
  0x9e   :  { %v64_v25 = vpop.f32.mrf.mxu0 }
  0x9f   :  { %v65_v26 = vadd.f32 %v122_v24, %v64_v25 }
  0xa1   :  { %v67_v27 = vmax.f32 %v65_v26, 0.0 }
  0xa3   :  { %119 = vmatmul.msk.f32.vlgmr.msra.gmra.mxu1 %vm76_vm1, %v67_v27 }
 0x120   :  { %v97_v29 = vpop.f32.mrf.mxu1 }
 0x121   :  { %v98_v30 = vadd.f32 %v123_v28, %v97_v29 }
 0x123   :  { %100 = vst [vmem:[#allocation2] sm:$0xff] %v98_v30 }
 0x124   :  { %111 = dma.vmem_to_hbm [thread:$0]  %s107_s13, 128, %s109_s3, [#allocation3]  }
 0x125   :  { %148 = dma.done.wait [#allocation3], 128  }
 0x126   :  { %149 = vsyncadd [#allocation3], 4294967168 }
 0x127   :  { %116 = vsyncpa [#allocation3], 1 }

</bundles_post_ra>
